<compile_context>
chip_gen: v7x
topology: tpu7x:2x2x1
jax: 0.10.0
libtpu: 0.0.40
codegen_flags: <defaults>
</compile_context>

<pallas_src>
import functools
import math

import jax
import jax.numpy as jnp
from jax.experimental import pallas as pl
from jax.experimental.pallas import tpu as pltpu

DROP_P = 0.3                                   # F.dropout(p=0.3, training=True)
_KEEP_THRESHOLD = int(round((1.0 - DROP_P) * (1 << 24)))   # keep iff bits24 < thr

# lowbias32-style mixer constants (written as int32-range Python ints; the
# second one is the two's-complement view of 0x846CA68B).
_MIX1 = 0x7FEB352D
_MIX2 = 0x846CA68B - (1 << 32)
_SALT1 = 1013904242        # layer-1 dropout salt
_SALT2 = 1640531527        # layer-2 dropout salt
_SEED_MULT = 16777619      # FNV prime


def _round_up(n, m):
    return ((n + m - 1) // m) * m


def _mc_dropout_kernel(seed_ref,                       # SMEM (1,) int32
                       x_ref, w1_ref, b1_ref,
                       w2_ref, b2_ref,
                       w3_ref, b3_ref,
                       o_ref):
    tm = x_ref.shape[0]
    row_off = pl.program_id(0) * tm                    # global row offset of tile
    seed = seed_ref[0]

    def dropout(h, salt):
        # Counter-based hash RNG: unique int32 counter per (global row, col,
        # layer, seed), mixed by a lowbias32-style finalizer.  Logical right
        # shifts are emulated with arithmetic shift + mask (pure int32 ops,
        # supported by Mosaic and by interpret mode).
        r = jax.lax.broadcasted_iota(jnp.int32, h.shape, 0) + row_off
        c = jax.lax.broadcasted_iota(jnp.int32, h.shape, 1)
        z = r * h.shape[1] + c + seed * _SEED_MULT + salt
        z = z ^ ((z >> 16) & 0xFFFF)
        z = z * _MIX1
        z = z ^ ((z >> 15) & 0x1FFFF)
        z = z * _MIX2
        z = z ^ ((z >> 16) & 0xFFFF)
        bits = (z >> 8) & 0xFFFFFF                      # 24 uniform bits
        # Inverted-dropout 1/(1-p) scale is folded into w2/w3 at prep time.
        return jnp.where(bits < _KEEP_THRESHOLD, h, jnp.float32(0.0))

    # layer1 + sin + dropout  (bf16 MXU matmul, f32 accumulate/elementwise)
    x = x_ref[...].astype(jnp.bfloat16)
    h = jnp.dot(x, w1_ref[...], preferred_element_type=jnp.float32) + b1_ref[...]
    h = jnp.sin(h)
    h = dropout(h, _SALT1)

    # layer2 + relu + dropout
    h = jnp.dot(h.astype(jnp.bfloat16), w2_ref[...],
                preferred_element_type=jnp.float32) + b2_ref[...]
    h = jnp.maximum(h, jnp.float32(0.0))
    h = dropout(h, _SALT2)

    # layer3 (2*output_dim: mean + log-variance head), single store per tile.
    out = jnp.dot(h.astype(jnp.bfloat16), w3_ref[...],
                  preferred_element_type=jnp.float32) + b3_ref[...]
    o_ref[...] = out.astype(o_ref.dtype)


@functools.partial(jax.jit, static_argnames=("input_dim",))
def mc_dropout_forward(x, kparams, seed, *, input_dim):
    """One stochastic forward pass of the MC-dropout MLP in one Pallas kernel.

    x: any shape flattening to (-1, input_dim), float32.
    kparams: output of prepare_kernel_params (padded/transposed/bf16 weights).
    seed: int32 scalar controlling the dropout masks.
    """
    x2d = x.reshape(-1, input_dim)                     # == x.view(-1, input_dim)
    batch = x2d.shape[0]
    hidden = kparams["w1"].shape[1]                    # padded num_units
    out_f = kparams["w3"].shape[1]                     # 2 * output_dim

    # Batch tile: biggest convenient multiple of 8 up to 256 rows; tiny enough
    # for v7x's 64 MiB VMEM even with double-buffered x/out blocks and all
    # three (bf16) weights resident.
    tm = min(256, _round_up(batch, 8))
    padded_batch = _round_up(batch, tm)
    if padded_batch != batch:
        x2d = jnp.pad(x2d, ((0, padded_batch - batch), (0, 0)))
    n_tiles = padded_batch // tm

    seed_arr = jnp.reshape(jnp.asarray(seed, jnp.int32), (1,))

    smem = pl.BlockSpec(memory_space=pltpu.MemorySpace.SMEM)

    def const_spec(shape):                             # weight stays VMEM-resident
        return pl.BlockSpec(shape, lambda i: (0, 0))

    out = pl.pallas_call(
        _mc_dropout_kernel,
        out_shape=jax.ShapeDtypeStruct((padded_batch, out_f), jnp.float32),
        grid=(n_tiles,),
        in_specs=[
            smem,                                               # seed
            pl.BlockSpec((tm, input_dim), lambda i: (i, 0)),    # x tile
            const_spec((input_dim, hidden)), const_spec((1, hidden)),   # w1, b1
            const_spec((hidden, hidden)),    const_spec((1, hidden)),   # w2, b2
            const_spec((hidden, out_f)),     const_spec((1, out_f)),    # w3, b3
        ],
        out_specs=pl.BlockSpec((tm, out_f), lambda i: (i, 0)),
        compiler_params=pltpu.CompilerParams(
            dimension_semantics=("parallel",)),
    )(seed_arr, x2d,
      kparams["w1"], kparams["b1"],
      kparams["w2"], kparams["b2"],
      kparams["w3"], kparams["b3"])

    return out[:batch]


def init_params(key, input_dim, output_dim, num_units):
    """nn.Linear-style init: weight (out, in), bias (out,), U(-1/sqrt(fan_in), ...)."""
    def linear(k, fan_in, fan_out):
        kw, kb = jax.random.split(k)
        bound = 1.0 / math.sqrt(fan_in)
        w = jax.random.uniform(kw, (fan_out, fan_in), jnp.float32, -bound, bound)
        b = jax.random.uniform(kb, (fan_out,), jnp.float32, -bound, bound)
        return w, b

    k1, k2, k3 = jax.random.split(key, 3)
    w1, b1 = linear(k1, input_dim, num_units)
    w2, b2 = linear(k2, num_units, num_units)
    w3, b3 = linear(k3, num_units, 2 * output_dim)
    return {"w1": w1, "b1": b1, "w2": w2, "b2": b2, "w3": w3, "b3": b3}


def prepare_kernel_params(params, *, num_units, drop_prob=DROP_P):
    """One-time transform to kernel layout.

    - transpose weights to (in, out) so the hot path is x @ W + b,
    - zero-pad the hidden dim to a multiple of 128 (lane-dense, MXU friendly;
      mathematically a no-op),
    - fold the inverted-dropout scale 1/(1-p) into w2 and w3,
    - store weights in bf16 (halves VMEM/HBM bytes; f32 accumulation in-kernel).
    """
    hidden = _round_up(max(num_units, 1), 128)
    inv_keep = 1.0 / (1.0 - drop_prob)

    def pad_to(a, shape):
        return jnp.pad(a, [(0, t - s) for s, t in zip(a.shape, shape)])

    w1 = params["w1"].T                     # (in, num_units)
    w2 = params["w2"].T                     # (num_units, num_units)
    w3 = params["w3"].T                     # (num_units, 2*output_dim)
    in_dim, out_f = w1.shape[0], w3.shape[1]

    return {
        "w1": pad_to(w1, (in_dim, hidden)).astype(jnp.bfloat16),
        "b1": pad_to(params["b1"].reshape(1, -1), (1, hidden)).astype(jnp.float32),
        "w2": pad_to(w2 * inv_keep, (hidden, hidden)).astype(jnp.bfloat16),
        "b2": pad_to(params["b2"].reshape(1, -1), (1, hidden)).astype(jnp.float32),
        "w3": pad_to(w3 * inv_keep, (hidden, out_f)).astype(jnp.bfloat16),
        "b3": params["b3"].reshape(1, -1).astype(jnp.float32),
    }


if __name__ == "__main__":
    # Small shapes consistent with the module: regression MLP.
    input_dim, output_dim, num_units = 4, 1, 32
    batch = 8

    key = jax.random.PRNGKey(0)
    kx, kp = jax.random.split(key)

    x = jax.random.normal(kx, (batch, input_dim), jnp.float32)
    raw_params = init_params(kp, input_dim, output_dim, num_units)
    kparams = prepare_kernel_params(raw_params, num_units=num_units)

    # TODO(synk): for T MC-dropout samples, fold the sample axis into the batch
    # grid (vary `seed` per sample) instead of calling the kernel T times.
    out = mc_dropout_forward(x, kparams, seed=1234, input_dim=input_dim)
    out = jax.block_until_ready(out)

    assert out.shape == (batch, 2 * output_dim), out.shape
    assert out.dtype == jnp.float32
    assert bool(jnp.all(jnp.isfinite(out)))
    print("KERNEL_OK")
</pallas_src>

<mosaic_0001>
module attributes {stable_mosaic.version = 11 : i64} {
  func.func @_mc_dropout_kernel(%arg0: i32, %arg1: memref<1xi32, #tpu.memory_space<smem>>, %arg2: memref<8x4xf32, #tpu.memory_space<vmem>>, %arg3: memref<4x128xbf16, #tpu.memory_space<vmem>>, %arg4: memref<1x128xf32, #tpu.memory_space<vmem>>, %arg5: memref<128x128xbf16, #tpu.memory_space<vmem>>, %arg6: memref<1x128xf32, #tpu.memory_space<vmem>>, %arg7: memref<128x2xbf16, #tpu.memory_space<vmem>>, %arg8: memref<1x2xf32, #tpu.memory_space<vmem>>, %arg9: memref<8x2xf32, #tpu.memory_space<vmem>>) attributes {dimension_semantics = [#tpu.dimension_semantics<parallel>], iteration_bounds = array<i64: 1>, scalar_prefetch = 0 : i64, scratch_operands = 0 : i64, tpu.core_type = #tpu.core_type<tc>, window_params = [{transform_indices = @transform_0, window_bounds = array<i64: 1>}, {transform_indices = @transform_1, window_bounds = array<i64: 8, 4>}, {pipeline_mode = #tpu.pipeline_mode<synchronous>, transform_indices = @transform_2, window_bounds = array<i64: 4, 128>}, {pipeline_mode = #tpu.pipeline_mode<synchronous>, transform_indices = @transform_3, window_bounds = array<i64: 1, 128>}, {pipeline_mode = #tpu.pipeline_mode<synchronous>, transform_indices = @transform_4, window_bounds = array<i64: 128, 128>}, {pipeline_mode = #tpu.pipeline_mode<synchronous>, transform_indices = @transform_5, window_bounds = array<i64: 1, 128>}, {pipeline_mode = #tpu.pipeline_mode<synchronous>, transform_indices = @transform_6, window_bounds = array<i64: 128, 2>}, {pipeline_mode = #tpu.pipeline_mode<synchronous>, transform_indices = @transform_7, window_bounds = array<i64: 1, 2>}, {transform_indices = @transform_8, window_bounds = array<i64: 8, 2>}]} {
    %c8_i32 = arith.constant 8 : i32
    %0 = arith.muli %arg0, %c8_i32 : i32
    %c0 = arith.constant 0 : index
    %1 = memref.load %arg1[%c0] : memref<1xi32, #tpu.memory_space<smem>>
    %c0_0 = arith.constant 0 : index
    %c0_1 = arith.constant 0 : index
    %2 = vector.load %arg2[%c0_0, %c0_1] : memref<8x4xf32, #tpu.memory_space<vmem>>, vector<8x4xf32>
    %3 = arith.truncf %2 : vector<8x4xf32> to vector<8x4xbf16>
    %c0_2 = arith.constant 0 : index
    %c0_3 = arith.constant 0 : index
    %4 = vector.load %arg3[%c0_2, %c0_3] : memref<4x128xbf16, #tpu.memory_space<vmem>>, vector<4x128xbf16>
    %cst = arith.constant dense<0.000000e+00> : vector<8x128xf32>
    %5 = tpu.matmul %3, %4, %cst {dimension_numbers = #tpu.dot_dimension_numbers<[1], [0], [0], [1], [0, 0, 1, 1], [], []>} : vector<8x4xbf16>, vector<4x128xbf16>, vector<8x128xf32> -> vector<8x128xf32>
    %c0_4 = arith.constant 0 : index
    %c0_5 = arith.constant 0 : index
    %6 = vector.load %arg4[%c0_4, %c0_5] : memref<1x128xf32, #tpu.memory_space<vmem>>, vector<1x128xf32>
    %7 = vector.broadcast %6 : vector<1x128xf32> to vector<8x128xf32>
    %8 = arith.addf %5, %7 : vector<8x128xf32>
    %9 = math.sin %8 : vector<8x128xf32>
    %10 = tpu.iota {dimensions = array<i32: 0>} : vector<8x128xi32>
    %11 = vector.broadcast %0 : i32 to vector<8x128xi32>
    %12 = arith.addi %10, %11 : vector<8x128xi32>
    %13 = tpu.iota {dimensions = array<i32: 1>} : vector<8x128xi32>
    %c128_i32 = arith.constant 128 : i32
    %14 = vector.broadcast %c128_i32 : i32 to vector<8x128xi32>
    %15 = arith.muli %12, %14 : vector<8x128xi32>
    %16 = arith.addi %15, %13 : vector<8x128xi32>
    %c16777619_i32 = arith.constant 16777619 : i32
    %17 = arith.muli %1, %c16777619_i32 : i32
    %18 = vector.broadcast %17 : i32 to vector<8x128xi32>
    %19 = arith.addi %16, %18 : vector<8x128xi32>
    %c1013904242_i32 = arith.constant 1013904242 : i32
    %20 = vector.broadcast %c1013904242_i32 : i32 to vector<8x128xi32>
    %21 = arith.addi %19, %20 : vector<8x128xi32>
    %c16_i32 = arith.constant 16 : i32
    %22 = vector.broadcast %c16_i32 : i32 to vector<8x128xi32>
    %23 = arith.shrsi %21, %22 : vector<8x128xi32>
    %c65535_i32 = arith.constant 65535 : i32
    %24 = vector.broadcast %c65535_i32 : i32 to vector<8x128xi32>
    %25 = arith.andi %23, %24 : vector<8x128xi32>
    %26 = arith.xori %21, %25 : vector<8x128xi32>
    %c2146121005_i32 = arith.constant 2146121005 : i32
    %27 = vector.broadcast %c2146121005_i32 : i32 to vector<8x128xi32>
    %28 = arith.muli %26, %27 : vector<8x128xi32>
    %c15_i32 = arith.constant 15 : i32
    %29 = vector.broadcast %c15_i32 : i32 to vector<8x128xi32>
    %30 = arith.shrsi %28, %29 : vector<8x128xi32>
    %c131071_i32 = arith.constant 131071 : i32
    %31 = vector.broadcast %c131071_i32 : i32 to vector<8x128xi32>
    %32 = arith.andi %30, %31 : vector<8x128xi32>
    %33 = arith.xori %28, %32 : vector<8x128xi32>
    %c-2073254261_i32 = arith.constant -2073254261 : i32
    %34 = vector.broadcast %c-2073254261_i32 : i32 to vector<8x128xi32>
    %35 = arith.muli %33, %34 : vector<8x128xi32>
    %c16_i32_6 = arith.constant 16 : i32
    %36 = vector.broadcast %c16_i32_6 : i32 to vector<8x128xi32>
    %37 = arith.shrsi %35, %36 : vector<8x128xi32>
    %c65535_i32_7 = arith.constant 65535 : i32
    %38 = vector.broadcast %c65535_i32_7 : i32 to vector<8x128xi32>
    %39 = arith.andi %37, %38 : vector<8x128xi32>
    %40 = arith.xori %35, %39 : vector<8x128xi32>
    %c8_i32_8 = arith.constant 8 : i32
    %41 = vector.broadcast %c8_i32_8 : i32 to vector<8x128xi32>
    %42 = arith.shrsi %40, %41 : vector<8x128xi32>
    %c16777215_i32 = arith.constant 16777215 : i32
    %43 = vector.broadcast %c16777215_i32 : i32 to vector<8x128xi32>
    %44 = arith.andi %42, %43 : vector<8x128xi32>
    %c11744051_i32 = arith.constant 11744051 : i32
    %45 = vector.broadcast %c11744051_i32 : i32 to vector<8x128xi32>
    %46 = arith.cmpi slt, %44, %45 : vector<8x128xi32>
    %cst_9 = arith.constant 0.000000e+00 : f32
    %47 = vector.broadcast %cst_9 : f32 to vector<8x128xf32>
    %48 = arith.select %46, %9, %47 : vector<8x128xi1>, vector<8x128xf32>
    %49 = arith.truncf %48 : vector<8x128xf32> to vector<8x128xbf16>
    %c0_10 = arith.constant 0 : index
    %c0_11 = arith.constant 0 : index
    %50 = vector.load %arg5[%c0_10, %c0_11] : memref<128x128xbf16, #tpu.memory_space<vmem>>, vector<128x128xbf16>
    %cst_12 = arith.constant dense<0.000000e+00> : vector<8x128xf32>
    %51 = tpu.matmul %49, %50, %cst_12 {dimension_numbers = #tpu.dot_dimension_numbers<[1], [0], [0], [1], [0, 0, 1, 1], [], []>} : vector<8x128xbf16>, vector<128x128xbf16>, vector<8x128xf32> -> vector<8x128xf32>
    %c0_13 = arith.constant 0 : index
    %c0_14 = arith.constant 0 : index
    %52 = vector.load %arg6[%c0_13, %c0_14] : memref<1x128xf32, #tpu.memory_space<vmem>>, vector<1x128xf32>
    %53 = vector.broadcast %52 : vector<1x128xf32> to vector<8x128xf32>
    %54 = arith.addf %51, %53 : vector<8x128xf32>
    %cst_15 = arith.constant 0.000000e+00 : f32
    %55 = vector.broadcast %cst_15 : f32 to vector<8x128xf32>
    %56 = arith.maximumf %54, %55 : vector<8x128xf32>
    %57 = tpu.iota {dimensions = array<i32: 0>} : vector<8x128xi32>
    %58 = vector.broadcast %0 : i32 to vector<8x128xi32>
    %59 = arith.addi %57, %58 : vector<8x128xi32>
    %60 = tpu.iota {dimensions = array<i32: 1>} : vector<8x128xi32>
    %c128_i32_16 = arith.constant 128 : i32
    %61 = vector.broadcast %c128_i32_16 : i32 to vector<8x128xi32>
    %62 = arith.muli %59, %61 : vector<8x128xi32>
    %63 = arith.addi %62, %60 : vector<8x128xi32>
    %c16777619_i32_17 = arith.constant 16777619 : i32
    %64 = arith.muli %1, %c16777619_i32_17 : i32
    %65 = vector.broadcast %64 : i32 to vector<8x128xi32>
    %66 = arith.addi %63, %65 : vector<8x128xi32>
    %c1640531527_i32 = arith.constant 1640531527 : i32
    %67 = vector.broadcast %c1640531527_i32 : i32 to vector<8x128xi32>
    %68 = arith.addi %66, %67 : vector<8x128xi32>
    %c16_i32_18 = arith.constant 16 : i32
    %69 = vector.broadcast %c16_i32_18 : i32 to vector<8x128xi32>
    %70 = arith.shrsi %68, %69 : vector<8x128xi32>
    %c65535_i32_19 = arith.constant 65535 : i32
    %71 = vector.broadcast %c65535_i32_19 : i32 to vector<8x128xi32>
    %72 = arith.andi %70, %71 : vector<8x128xi32>
    %73 = arith.xori %68, %72 : vector<8x128xi32>
    %c2146121005_i32_20 = arith.constant 2146121005 : i32
    %74 = vector.broadcast %c2146121005_i32_20 : i32 to vector<8x128xi32>
    %75 = arith.muli %73, %74 : vector<8x128xi32>
    %c15_i32_21 = arith.constant 15 : i32
    %76 = vector.broadcast %c15_i32_21 : i32 to vector<8x128xi32>
    %77 = arith.shrsi %75, %76 : vector<8x128xi32>
    %c131071_i32_22 = arith.constant 131071 : i32
    %78 = vector.broadcast %c131071_i32_22 : i32 to vector<8x128xi32>
    %79 = arith.andi %77, %78 : vector<8x128xi32>
    %80 = arith.xori %75, %79 : vector<8x128xi32>
    %c-2073254261_i32_23 = arith.constant -2073254261 : i32
    %81 = vector.broadcast %c-2073254261_i32_23 : i32 to vector<8x128xi32>
    %82 = arith.muli %80, %81 : vector<8x128xi32>
    %c16_i32_24 = arith.constant 16 : i32
    %83 = vector.broadcast %c16_i32_24 : i32 to vector<8x128xi32>
    %84 = arith.shrsi %82, %83 : vector<8x128xi32>
    %c65535_i32_25 = arith.constant 65535 : i32
    %85 = vector.broadcast %c65535_i32_25 : i32 to vector<8x128xi32>
    %86 = arith.andi %84, %85 : vector<8x128xi32>
    %87 = arith.xori %82, %86 : vector<8x128xi32>
    %c8_i32_26 = arith.constant 8 : i32
    %88 = vector.broadcast %c8_i32_26 : i32 to vector<8x128xi32>
    %89 = arith.shrsi %87, %88 : vector<8x128xi32>
    %c16777215_i32_27 = arith.constant 16777215 : i32
    %90 = vector.broadcast %c16777215_i32_27 : i32 to vector<8x128xi32>
    %91 = arith.andi %89, %90 : vector<8x128xi32>
    %c11744051_i32_28 = arith.constant 11744051 : i32
    %92 = vector.broadcast %c11744051_i32_28 : i32 to vector<8x128xi32>
    %93 = arith.cmpi slt, %91, %92 : vector<8x128xi32>
    %cst_29 = arith.constant 0.000000e+00 : f32
    %94 = vector.broadcast %cst_29 : f32 to vector<8x128xf32>
    %95 = arith.select %93, %56, %94 : vector<8x128xi1>, vector<8x128xf32>
    %96 = arith.truncf %95 : vector<8x128xf32> to vector<8x128xbf16>
    %c0_30 = arith.constant 0 : index
    %c0_31 = arith.constant 0 : index
    %97 = vector.load %arg7[%c0_30, %c0_31] : memref<128x2xbf16, #tpu.memory_space<vmem>>, vector<128x2xbf16>
    %cst_32 = arith.constant dense<0.000000e+00> : vector<8x2xf32>
    %98 = tpu.matmul %96, %97, %cst_32 {dimension_numbers = #tpu.dot_dimension_numbers<[1], [0], [0], [1], [0, 0, 1, 1], [], []>} : vector<8x128xbf16>, vector<128x2xbf16>, vector<8x2xf32> -> vector<8x2xf32>
    %c0_33 = arith.constant 0 : index
    %c0_34 = arith.constant 0 : index
    %99 = vector.load %arg8[%c0_33, %c0_34] : memref<1x2xf32, #tpu.memory_space<vmem>>, vector<1x2xf32>
    %100 = vector.broadcast %99 : vector<1x2xf32> to vector<8x2xf32>
    %101 = arith.addf %98, %100 : vector<8x2xf32>
    %c0_35 = arith.constant 0 : index
    %c0_36 = arith.constant 0 : index
    %102 = vector.load %arg9[%c0_35, %c0_36] : memref<8x2xf32, #tpu.memory_space<vmem>>, vector<8x2xf32>
    tpu.vector_store %arg9[%c0_35, %c0_36], %101 {strides = array<i32>} : memref<8x2xf32, #tpu.memory_space<vmem>>, vector<8x2xf32>,
    return
  }
  func.func @transform_0(%arg0: i32) -> i32 {
    %c0_i32 = arith.constant 0 : i32
    %c0_i32_0 = arith.constant 0 : i32
    return %c0_i32 : i32
  }
  func.func @transform_1(%arg0: i32) -> (i32, i32) {
    %c0_i32 = arith.constant 0 : i32
    %c0_i32_0 = arith.constant 0 : i32
    return %arg0, %c0_i32 : i32, i32
  }
  func.func @transform_2(%arg0: i32) -> (i32, i32) {
    %c0_i32 = arith.constant 0 : i32
    %c0_i32_0 = arith.constant 0 : i32
    %c0_i32_1 = arith.constant 0 : i32
    return %c0_i32, %c0_i32_0 : i32, i32
  }
  func.func @transform_3(%arg0: i32) -> (i32, i32) {
    %c0_i32 = arith.constant 0 : i32
    %c0_i32_0 = arith.constant 0 : i32
    %c0_i32_1 = arith.constant 0 : i32
    return %c0_i32, %c0_i32_0 : i32, i32
  }
  func.func @transform_4(%arg0: i32) -> (i32, i32) {
    %c0_i32 = arith.constant 0 : i32
    %c0_i32_0 = arith.constant 0 : i32
    %c0_i32_1 = arith.constant 0 : i32
    return %c0_i32, %c0_i32_0 : i32, i32
  }
  func.func @transform_5(%arg0: i32) -> (i32, i32) {
    %c0_i32 = arith.constant 0 : i32
    %c0_i32_0 = arith.constant 0 : i32
    %c0_i32_1 = arith.constant 0 : i32
    return %c0_i32, %c0_i32_0 : i32, i32
  }
  func.func @transform_6(%arg0: i32) -> (i32, i32) {
    %c0_i32 = arith.constant 0 : i32
    %c0_i32_0 = arith.constant 0 : i32
    %c0_i32_1 = arith.constant 0 : i32
    return %c0_i32, %c0_i32_0 : i32, i32
  }
  func.func @transform_7(%arg0: i32) -> (i32, i32) {
    %c0_i32 = arith.constant 0 : i32
    %c0_i32_0 = arith.constant 0 : i32
    %c0_i32_1 = arith.constant 0 : i32
    return %c0_i32, %c0_i32_0 : i32, i32
  }
  func.func @transform_8(%arg0: i32) -> (i32, i32) {
    %c0_i32 = arith.constant 0 : i32
    %c0_i32_0 = arith.constant 0 : i32
    return %arg0, %c0_i32 : i32, i32
  }
}

</mosaic_0001>

<bundles_post_ra>
// kernel: mc_dropout_forward.1
= control target key start
LH: loop header
LB: loop body
LE: loop exit
PB: predicated region body
PF: predicated region fallthrough
CT: control target
= control target key end

     0   :  { %vm47_vm0 = vcmask 1041408   ;;  %v605_v0 = vmov 0.0   ;;  %vm606_vm1 = vmmov 0   ;;  %vm43_vm2 = vcmask 31744   ;;  %s772_s2 = inlined_call_operand.vmem [shape: bf16[4,128], index: 2, kind: input, shape index: {}]   ;;  %s773_s1 = inlined_call_operand.vmem [shape: f32[8,4], index: 1, kind: input, shape index: {}]   ;;  %s774_s4 = inlined_call_operand.vmem [shape: bf16[128,128], index: 4, kind: input, shape index: {}]   ;;  %s775_s6 = inlined_call_operand.vmem [shape: bf16[128,2], index: 6, kind: input, shape index: {}]   ;;  %s776_s3 = inlined_call_operand.vmem [shape: f32[1,128], index: 3, kind: input, shape index: {}]   ;;  %s777_s0 = inlined_call_operand.<no memory space> [shape: s32[1], index: 0, kind: input, shape index: {}]   ;;  %s778_s5 = inlined_call_operand.vmem [shape: f32[1,128], index: 5, kind: input, shape index: {}]   ;;  %s779_s7 = inlined_call_operand.vmem [shape: f32[1,2], index: 7, kind: input, shape index: {}]   ;;  %s780_s8 = inlined_call_operand.vmem [shape: f32[8,2], index: 8, kind: output, shape index: {}]  }
   0x1   :  { %527 = vmatprep.subr.bf16.mxu0 %v605_v0  ;;  %v35_v1 = vld [vmem:[%s772_s2] sm:$0x3]  ;;  %529 = vmatprep.mubr.msk.bf16.mxu0 %vm606_vm1, %v605_v0  ;;  %v586_v6 = vld [vmem:[%s774_s4 + $0x8] sm:$0xff]   ;;  %v587_v7 = vld [vmem:[%s774_s4 + $0x10] sm:$0xff]   ;;  %v607_v35 = vmov 683565275   ;;  %v195_v39 = vlaneseq }
   0x2   :  { %v33_v2 = vld [vmem:[%s773_s1] sm:$0xff]  ;;  %v49_v3 = vsel %vm47_vm0, %v35_v1, 0  ;;  %533 = vmatprep.subr.bf16.mxu1 %v605_v0  ;;  %549 = vmatprep.mubr.msk.bf16.mxu1 %vm606_vm1, %v605_v0  ;;  %v588_v8 = vld [vmem:[%s774_s4 + $0x18] sm:$0xff]   ;;  %v590_v10 = vld [vmem:[%s774_s4 + $0x28] sm:$0xff]   ;;  %v608_v37 = vmov 2475754826  }
   0x3   :  { %v34_v4 = vpack.c.bf16 %v33_v2, %v33_v2  ;;  %528 = vmatpush3.bf16.msra.mxu0 %v49_v3  ;;  %v585_v5 = vld [vmem:[%s774_s4] sm:$0xff]   ;;  %v591_v11 = vld [vmem:[%s774_s4 + $0x30] sm:$0xff]   ;;  %v592_v12 = vld [vmem:[%s774_s4 + $0x38] sm:$0xff]   ;;  %v609_v41 = vmov 2131351028   ;;  %v196_v61 = vshrl.u32 %v195_v39, 7 }
   0x4   :  { %553 = vmatprep.subr.bf16.mxu0 %v605_v0  ;;  %534 = vmatpush3.bf16.msra.mxu1 %v585_v5  ;;  %v589_v9 = vld [vmem:[%s774_s4 + $0x20] sm:$0xff]   ;;  %v594_v14 = vld [vmem:[%s775_s6 + $0x8] sm:$0xff]   ;;  %v595_v15 = vld [vmem:[%s775_s6 + $0x10] sm:$0xff]   ;;  %v610_v44 = vmov 2102212464  }
   0x5   :  { %535 = vmatprep.subr.bf16.mxu1 %v605_v0  ;;  %v593_v13 = vld [vmem:[%s775_s6] sm:$0xff]   ;;  %v596_v16 = vld [vmem:[%s775_s6 + $0x18] sm:$0xff]   ;;  %v598_v18 = vld [vmem:[%s775_s6 + $0x28] sm:$0xff]   ;;  %v611_v47 = vmov 920167782  }
   0x6   :  { %530 = vmatmul.mubr.msk.bf16.vlgmr.msra.gmra.mrb[0].mxu0 %vm43_vm2, %v34_v4  ;;  %v597_v17 = vld [vmem:[%s775_s6 + $0x20] sm:$0xff]   ;;  %v612_v50 = vmov 1326507024   ;;  %s203_s13 = smul.u32 16777619, %s777_s0 }
   0x7   :  { %569 = vmatprep.mubr.msk.bf16.mxu0 %vm606_vm1, %v605_v0  ;;  %554 = vmatpush3.bf16.msra.mxu0 %v593_v13  ;;  %v469_v19 = vld [vmem:[%s776_s3] ss:$0 sm:$0xff] }
   0x8   :  { %536 = vmatpush3.bf16.msra.mxu1 %v586_v6  ;;  %555 = vmatprep.subr.bf16.mxu0 %v605_v0 }
   0x9   :  { %537 = vmatprep.subr.bf16.mxu1 %v605_v0 }
   0xb   :  { %556 = vmatpush3.bf16.msra.mxu0 %v594_v14 }
   0xc   :  { %538 = vmatpush3.bf16.msra.mxu1 %v587_v7  ;;  %557 = vmatprep.subr.bf16.mxu0 %v605_v0 }
   0xd   :  { %539 = vmatprep.subr.bf16.mxu1 %v605_v0 }
   0xf   :  { %558 = vmatpush3.bf16.msra.mxu0 %v595_v15  ;;  %v200_v15 = vand.u32 127, %v195_v39 }
  0x10   :  { %540 = vmatpush3.bf16.msra.mxu1 %v588_v8  ;;  %559 = vmatprep.subr.bf16.mxu0 %v605_v0 }
  0x11   :  { %541 = vmatprep.subr.bf16.mxu1 %v605_v0 }
  0x13   :  { %560 = vmatpush3.bf16.msra.mxu0 %v596_v16  ;;  %v201_v16 = vmul.u32 128, %v196_v61 }
  0x14   :  { %542 = vmatpush3.bf16.msra.mxu1 %v589_v9  ;;  %561 = vmatprep.subr.bf16.mxu0 %v605_v0 }
  0x15   :  { %543 = vmatprep.subr.bf16.mxu1 %v605_v0 }
  0x17   :  { %562 = vmatpush3.bf16.msra.mxu0 %v597_v17 }
  0x18   :  { %544 = vmatpush3.bf16.msra.mxu1 %v590_v10  ;;  %563 = vmatprep.subr.bf16.mxu0 %v605_v0 }
  0x19   :  { %545 = vmatprep.subr.bf16.mxu1 %v605_v0 }
  0x1b   :  { %564 = vmatpush3.bf16.msra.mxu0 %v598_v18 }
  0x1c   :  { %546 = vmatpush3.bf16.msra.mxu1 %v591_v11  ;;  %565 = vmatprep.subr.bf16.mxu0 %v605_v0 }
  0x1d   :  { %547 = vmatprep.subr.bf16.mxu1 %v605_v0 }
  0x20   :  { %548 = vmatpush3.bf16.msra.mxu1 %v592_v12 }
  0xd9   :  { %v85_v20 = vpop.f32.mrb[0].mxu0 }
  0xda   :  { %v728_v21 = vadd.f32 %v469_v19, %v85_v20  ;;  %v531_v22 = vpop.f32.mrb[1].mxu0  ;;  %v202_v20 = vadd.s32 %v201_v16, %v200_v15 }
  0xdb   :  { %v88_v23 = vpop.f32.mrb[2].mxu0 }
  0xdc   :  { %v94_v24 = vand.u32 2139095040, %v728_v21  ;;  %v532_v25 = vpop.f32.mrb[3].mxu0  ;;  %v91_v29 = vand.u32 2147483647, %v728_v21  ;;  %v204_v23 = vstv %s203_s13  ;;  %vm93_vm10 = vcmp.lt.s32.totalorder %v728_v21, 0 }
  0xdd   :  { %v746_v25 = vadd.s32 %v204_v23, %v202_v20  ;;  %vm183_vm0 = vweird.f32 %v728_v21 }
  0xde   :  { %v95_v26 = vshrl.u32 %v94_v24, 23  ;;  %v98_v32 = vand.u32 8388607, %v91_v29  ;;  %vm92_vm11 = vcmp.le.f32.partialorder %v91_v29, 0.7853982 }
  0xe0   :  { %v471_v27 = vadd.s32 4294967169, %v95_v26  ;;  %v99_v52 = vor.u32 8388608, %v98_v32 }
  0xe2   :  { %v101_v28 = vadd.s32 1, %v471_v27  ;;  %v139_v4 = vshll.u32 %v99_v52, 8 }
  0xe4   :  { %vm102_vm3 = vcmp.gt.s32.totalorder %v101_v28, 0 }
  0xe5   :  { %v103_v30 = vsel %vm102_vm3, %v101_v28, 0  ;;  %v206_v28 = vadd.s32 1013904242, %v746_v25 }
  0xe6   :  { %v105_v31 = vand.u32 31, %v103_v30  ;;  %v104_v34 = vshrl.u32 %v103_v30, 5 }
  0xe7   :  { %v475_v32 = vshrl.u32 %v206_v28, 16 }
  0xe8   :  { %v106_v33 = vsub.s32 32, %v105_v31  ;;  %v108_v36 = vshll.u32 %v607_v35, %v105_v31  ;;  %v111_v38 = vshll.u32 %v608_v37, %v105_v31  ;;  %v114_v43 = vshll.u32 %v609_v41, %v105_v31 }
  0xe9   :  { %v117_v46 = vshll.u32 %v610_v44, %v105_v31  ;;  %v120_v49 = vshll.u32 %v611_v47, %v105_v31  ;;  %vm123_vm4 = vcmp.lt.s32.totalorder %v104_v34, 1  ;;  %vm126_vm5 = vcmp.lt.s32.totalorder %v104_v34, 4 }
  0xea   :  { %v109_v40 = vshrl.u32 %v608_v37, %v106_v33  ;;  %v112_v42 = vshrl.u32 %v609_v41, %v106_v33  ;;  %v115_v45 = vshrl.u32 %v610_v44, %v106_v33  ;;  %v118_v48 = vshrl.u32 %v611_v47, %v106_v33 }
  0xeb   :  { %v121_v51 = vshrl.u32 %v612_v50, %v106_v33  ;;  %v107_v62 = vshrl.u32 %v607_v35, %v106_v33  ;;  %vm125_vm6 = vcmp.lt.s32.totalorder %v104_v34, 3  ;;  %vm124_vm7 = vcmp.lt.s32.totalorder %v104_v34, 2 }
  0xec   :  { %v110_v53 = vor.u32 %v109_v40, %v108_v36  ;;  %v113_v54 = vor.u32 %v112_v42, %v111_v38  ;;  %v116_v55 = vor.u32 %v115_v45, %v114_v43  ;;  %v119_v56 = vor.u32 %v118_v48, %v117_v46 }
  0xed   :  { %v122_v57 = vor.u32 %v121_v51, %v120_v49  ;;  %v209_v35 = vxor.u32 %v475_v32, %v206_v28  ;;  %v495_v28 = vld [vmem:[%s779_s7] ss:$0 sm:$0xff] }
  0xee   :  { %v128_v58 = vsel %vm126_vm5, %v116_v55, 2102212464  ;;  %v131_v59 = vsel %vm123_vm4, %v110_v53, %v113_v54  ;;  %v135_v60 = vsel %vm123_vm4, %v113_v54, %v116_v55  ;;  %v132_v63 = vsel %vm126_vm5, %v119_v56, 920167782 }
  0xef   :  { %v136_v1 = vsel %vm126_vm5, %v122_v57, 1326507024  ;;  %v133_v2 = vsel %vm125_vm6, %v116_v55, %v132_v63  ;;  %v127_v5 = vsel %vm123_vm4, %v107_v62, %v110_v53  ;;  %v129_v6 = vsel %vm125_vm6, %v113_v54, %v128_v58 }
  0xf0   :  { %v137_v3 = vsel %vm125_vm6, %v119_v56, %v136_v1  ;;  %v134_v7 = vsel %vm124_vm7, %v131_v59, %v133_v2  ;;  %v130_v13 = vsel %vm124_vm7, %v127_v5, %v129_v6  ;;  %v210_v40 = vmul.u32 2146121005, %v209_v35 }
  0xf1   :  { %v138_v8 = vsel %vm124_vm7, %v135_v60, %v137_v3  ;;  %v737_v11 = vmul.u32.u64.low %v139_v4, %v134_v7  ;;  %v738_v12 = vmul.u32.u64.high %v139_v4, %v134_v7, %v737_v11  ;;  %v146_v17 = vmul.u32 %v139_v4, %v130_v13 }
  0xf2   :  { %v734_v9 = vmul.u32.u64.low %v139_v4, %v138_v8  ;;  %v735_v10 = vmul.u32.u64.high %v139_v4, %v138_v8, %v734_v9  ;;  %v476_v46 = vshrl.u32 %v210_v40, 15  ;;  %vm463_vm4 = vcmask 15360  }
  0xf3   :  { %v149_v14 = vadd.s32 1, %v738_v12  ;;  %v599_v9 = vld [vmem:[%s775_s6 + $0x30] sm:$0xff]  }
  0xf4   :  { %vm148_vm8 = vc.u32 %v735_v10, %v737_v11  ;;  %v147_v37 = vadd.s32 %v737_v11, %v735_v10  ;;  %v213_v50 = vxor.u32 %v476_v46, %v210_v40  ;;  %566 = vmatpush3.bf16.msra.mxu0 %v599_v9  ;;  %v600_v10 = vld [vmem:[%s775_s6 + $0x38] sm:$0xff]   ;;  %v335_v11 = vadd.s32 1640531527, %v746_v25 }
  0xf5   :  { %v150_v18 = vsel %vm148_vm8, %v149_v14, %v738_v12  ;;  %567 = vmatprep.subr.bf16.mxu0 %v605_v0  ;;  %v479_v0 = vld [vmem:[%s778_s5] ss:$0 sm:$0xff] }
  0xf6   :  { %v151_v19 = vadd.s32 %v150_v18, %v146_v17  ;;  %v214_v54 = vmul.u32 2221713035, %v213_v50 }
  0xf8   :  { %v152_v22 = vadd.s32 536870912, %v151_v19  ;;  %v477_v59 = vshrl.u32 %v214_v54, 16  ;;  %568 = vmatpush3.bf16.msra.mxu0 %v600_v10 }
  0xfa   :  { %v153_v24 = vshrl.u32 %v152_v22, 30  ;;  %v217_v61 = vxor.u32 %v477_v59, %v214_v54 }
  0xfc   :  { %v154_v26 = vshll.u32 %v153_v24, 30  ;;  %v177_v52 = vsub.s32 4, %v153_v24  ;;  %v478_v63 = vshrl.u32 %v217_v61, 8 }
  0xfe   :  { %v155_v27 = vsub.s32 %v151_v19, %v154_v26  ;;  %v178_v56 = vsel %vm93_vm10, %v177_v52, %v153_v24  ;;  %vm220_vm14 = vcmp.lt.s32.totalorder %v478_v63, 11744051 }
  0xff   :  { %v180_v58 = vsel %vm92_vm11, 0, %v178_v56  ;;  %vm488_vm1 = vmpackc.low %vm220_vm14, %vm220_vm14 }
 0x100   :  { %v157_v30 = vsub.s32 0, %v155_v27  ;;  %v184_v60 = vadd.s32 3, %v180_v58 }
 0x102   :  { %v472_v31 = vmin.u32 %v157_v30, %v155_v27  ;;  %v185_v62 = vand.u32 3, %v184_v60 }
 0x104   :  { %v159_v33 = vclz %v472_v31  ;;  %vm190_vm12 = vcmp.eq.s32.totalorder %v185_v62, 2  ;;  %vm187_vm13 = vcmp.eq.s32.totalorder %v185_v62, 0  ;;  %vm186_vm15 = vcmp.lt.s32.totalorder %v185_v62, 2 }
 0x106   :  { %v473_v34 = vadd.s32 4294967294, %v159_v33 }
 0x108   :  { %vm474_vm9 = vcmp.lt.s32.totalorder %v473_v34, 0 }
 0x109   :  { %v162_v36 = vsel %vm474_vm9, 0, %v473_v34 }
 0x10a   :  { %v163_v38 = vsub.s32 32, %v162_v36  ;;  %v167_v39 = vsub.s32 4294967266, %v162_v36  ;;  %v164_v41 = vshll.u32 %v155_v27, %v162_v36 }
 0x10c   :  { %v165_v42 = vshrl.u32 %v147_v37, %v163_v38  ;;  %v168_v43 = vadd.s32 127, %v167_v39 }
 0x10e   :  { %v166_v44 = vor.u32 %v165_v42, %v164_v41  ;;  %v169_v45 = vshll.u32 %v168_v43, 23 }
 0x110   :  { %v170_v47 = vor.u32 4788187, %v169_v45  ;;  %v173_v49 = vcvt.s32.f32 %v166_v44 }
 0x112   :  { %v171_v48 = vand.u32 2147483647, %v170_v47 }
 0x114   :  { %v174_v51 = vmul.f32 %v173_v49, %v171_v48 }
 0x116   :  { %v175_v53 = vxor.u32 2147483648, %v174_v51 }
 0x118   :  { %v176_v55 = vsel %vm93_vm10, %v175_v53, %v174_v51 }
 0x119   :  { %v179_v57 = vsel %vm92_vm11, %v728_v21, %v176_v55  ;;  %v491_v21 = vshrl.u32 %v335_v11, 16 }
 0x11a   :  { %601 = vcosq.f32 %v179_v57 }
 0x11b   :  { %603 = vsinq.f32 %v179_v57  ;;  %v338_v12 = vxor.u32 %v491_v21, %v335_v11 }
 0x11d   :  { %v339_v13 = vmul.u32 2146121005, %v338_v12 }
 0x11f   :  { %v492_v14 = vshrl.u32 %v339_v13, 15 }
 0x121   :  { %v342_v15 = vxor.u32 %v492_v14, %v339_v13 }
 0x123   :  { %v343_v16 = vmul.u32 2221713035, %v342_v15 }
 0x124   :  { %v602_v1 = vpop.eup %601 }
 0x125   :  { %v604_v2 = vpop.eup %603  ;;  %v191_v3 = vxor.u32 2147483648, %v602_v1  ;;  %v493_v17 = vshrl.u32 %v343_v16, 16 }
 0x126   :  { %v188_v4 = vxor.u32 2147483648, %v604_v2 }
 0x127   :  { %v192_v5 = vsel %vm190_vm12, %v191_v3, %v604_v2  ;;  %v346_v18 = vxor.u32 %v493_v17, %v343_v16 }
 0x128   :  { %v189_v29 = vsel %vm187_vm13, %v602_v1, %v188_v4 }
 0x129   :  { %v193_v6 = vsel %vm186_vm15, %v189_v29, %v192_v5  ;;  %v494_v19 = vshrl.u32 %v346_v18, 8 }
 0x12a   :  { %v194_v7 = vsel %vm183_vm0, nan, %v193_v6 }
 0x12b   :  { %v489_v8 = vpack.c.bf16 %v194_v7, %v194_v7  ;;  %vm349_vm2 = vcmp.lt.s32.totalorder %v494_v19, 11744051 }
 0x12c   :  { %vm504_vm3 = vmpackc.low %vm349_vm2, %vm349_vm2 }
 0x12d   :  { %550 = vmatmul.mubr.msk.bf16.vlgmr.msra.gmra.mrb[0].mxu1 %vm488_vm1, %v489_v8 }
 0x200   :  { %v328_v20 = vpop.f32.mrb[0].mxu1 }
 0x201   :  { %v329_v22 = vadd.f32 %v479_v0, %v328_v20  ;;  %v551_v23 = vpop.f32.mrb[1].mxu1 }
 0x202   :  { %v331_v24 = vpop.f32.mrb[2].mxu1 }
 0x203   :  { %v334_v26 = vmax.f32 %v329_v22, 0.0  ;;  %v552_v25 = vpop.f32.mrb[3].mxu1 }
 0x205   :  { %v505_v27 = vpack.c.bf16 %v334_v26, %v334_v26 }
 0x207   :  { %570 = vmatmul.mubr.msk.bf16.vlgmr.msra.gmra.mrb[4].mxu0 %vm504_vm3, %v505_v27 }
 0x2da   :  { %v457_v30 = vpop.f32.mrb[4].mxu0 }
 0x2db   :  { %v458_v31 = vadd.f32 %v495_v28, %v457_v30  ;;  %v571_v32 = vpop.f32.mrb[5].mxu0 }
 0x2dc   :  { %v460_v33 = vpop.f32.mrb[6].mxu0 }
 0x2dd   :  { %464 = vst.msk [vmem:[%s780_s8] sm:$0xff] %vm463_vm4, %v458_v31  ;;  %v572_v34 = vpop.f32.mrb[7].mxu0 }

</bundles_post_ra>
